<compile_context>
chip_gen: v6e
topology: v6e:2x2x1
jax: 0.10.0
libtpu: 0.0.40
codegen_flags: <defaults>
</compile_context>

<pallas_src>
import math

import jax
import jax.numpy as jnp
from jax.experimental import pallas as pl
from jax.experimental.pallas import tpu as pltpu


def _round_up(v, m):
    return (v + m - 1) // m * m


def textcnn_kernel(xc_ref, w_ref, b_ref, mask_ref, fcw_ref, fcb_ref, out_ref):
    """One batch tile, fully fused.

    xc_ref   : (TB, L, K)       K = fs_max * E   (im2col windows)
    w_ref    : (K, Npad)        combined conv weight (zero-padded taps/banks/lanes)
    b_ref    : (1, Npad)        combined conv bias
    mask_ref : (L, Npad)        1.0 where window position is valid for that bank
    fcw_ref  : (Npad, Opad)     padded fc weight (already transposed)
    fcb_ref  : (1, Opad)        padded fc bias
    out_ref  : (TB, Opad)       lane-dense output (valid cols sliced by wrapper)
    """
    # One fused conv-bank contraction on the MXU: (TB, L, K) x (K, Npad).
    conv = jax.lax.dot_general(
        xc_ref[...], w_ref[...],
        dimension_numbers=(((2,), (0,)), ((), ())),
        preferred_element_type=jnp.float32)                     # (TB, L, Npad) f32

    # Bias + ReLU (VPU), then zero out window positions that are invalid for each
    # filter bank (shorter filters have more valid positions than longer ones).
    act = jnp.maximum(conv + b_ref[...][None, :, :], 0.0)
    act = act * mask_ref[...][None, :, :]

    # Max-over-time pooling (reduction over the sublane/time axis).
    pooled = jnp.max(act, axis=1)                               # (TB, Npad)

    # Final Linear on the MXU; padded rows of fcw are zero so lane padding is inert.
    out = jax.lax.dot_general(
        pooled.astype(fcw_ref.dtype), fcw_ref[...],
        dimension_numbers=(((1,), (0,)), ((), ())),
        preferred_element_type=jnp.float32)                     # (TB, Opad)
    out_ref[...] = out + fcb_ref[...]


def textcnn_forward(x, conv_ws, conv_bs, fc_w, fc_b, filter_sizes,
                    *, batch_tile=8, compute_dtype=jnp.float32):
    """x: (B, S, E) float32.  conv_ws[j]: (F, E, fs_j) torch layout.  fc_w: (O, 3F)."""
    B, S, E = x.shape
    F = conv_ws[0].shape[0]
    O = fc_w.shape[0]
    n_banks = len(filter_sizes)
    fs_max, fs_min = max(filter_sizes), min(filter_sizes)
    assert S >= fs_max, "sequence shorter than largest filter"
    assert B % batch_tile == 0, "batch must be a multiple of batch_tile"

    L = S - fs_min + 1                     # window positions (enough for every bank)
    K = fs_max * E                         # fused contraction depth
    NB = n_banks * F                       # true concat width (3*F)
    N_pad = _round_up(max(NB, 128), 128)   # lane-dense filter/column dim
    O_pad = _round_up(max(O, 128), 128)    # lane-dense output dim

    # --- im2col: shifted windows of x, zero-padded in time for the longest filter ---
    x_pad = jnp.pad(x, ((0, 0), (0, fs_max - fs_min), (0, 0)))
    x_col = jnp.concatenate([x_pad[:, k:k + L, :] for k in range(fs_max)],
                            axis=-1)                              # (B, L, K)

    # --- combined conv weight / bias / validity mask ---
    w_comb = jnp.zeros((K, N_pad), jnp.float32)
    b_comb = jnp.zeros((1, N_pad), jnp.float32)
    mask = jnp.zeros((L, N_pad), jnp.float32)
    for j, (w, b, fs) in enumerate(zip(conv_ws, conv_bs, filter_sizes)):
        # torch (F, E, fs) -> (fs, E, F) -> (fs*E, F); taps beyond fs stay zero.
        wj = jnp.transpose(w, (2, 1, 0)).reshape(fs * E, F)
        w_comb = w_comb.at[:fs * E, j * F:(j + 1) * F].set(wj)
        b_comb = b_comb.at[0, j * F:(j + 1) * F].set(b)
        mask = mask.at[:S - fs + 1, j * F:(j + 1) * F].set(1.0)

    # --- padded FC params (eliminates the lane-axis concat: banks already adjacent) ---
    fcw_pad = jnp.zeros((N_pad, O_pad), jnp.float32).at[:NB, :O].set(fc_w.T)
    fcb_pad = jnp.zeros((1, O_pad), jnp.float32).at[0, :O].set(fc_b)

    # Optional bf16 MXU path (v6e/v7x); accumulation stays f32 inside the kernel.
    x_col_c = x_col.astype(compute_dtype)
    w_comb_c = w_comb.astype(compute_dtype)
    fcw_c = fcw_pad.astype(compute_dtype)

    grid = (B // batch_tile,)
    out_pad = pl.pallas_call(
        textcnn_kernel,
        out_shape=jax.ShapeDtypeStruct((B, O_pad), jnp.float32),
        grid=grid,
        in_specs=[
            pl.BlockSpec((batch_tile, L, K), lambda i: (i, 0, 0)),   # batch-tiled x_col
            pl.BlockSpec((K, N_pad), lambda i: (0, 0)),              # conv weight (const)
            pl.BlockSpec((1, N_pad), lambda i: (0, 0)),              # conv bias   (const)
            pl.BlockSpec((L, N_pad), lambda i: (0, 0)),              # validity mask
            pl.BlockSpec((N_pad, O_pad), lambda i: (0, 0)),          # fc weight   (const)
            pl.BlockSpec((1, O_pad), lambda i: (0, 0)),              # fc bias     (const)
        ],
        out_specs=pl.BlockSpec((batch_tile, O_pad), lambda i: (i, 0)),
        compiler_params=pltpu.CompilerParams(
            dimension_semantics=("parallel",)),   # batch tiles independent -> megacore
    )(x_col_c, w_comb_c, b_comb, mask, fcw_c, fcb_pad)

    return out_pad[:, :O]


def reference_forward(x, conv_ws, conv_bs, fc_w, fc_b, filter_sizes):
    """Pure-JAX mirror of the PyTorch TextCNN.forward (eval mode)."""
    x_ncl = jnp.transpose(x, (0, 2, 1))                     # (B, E, S) == x.permute(0,2,1)
    pooled = []
    for w, b, _fs in zip(conv_ws, conv_bs, filter_sizes):
        y = jax.lax.conv_general_dilated(
            x_ncl, w, window_strides=(1,), padding="VALID",
            dimension_numbers=("NCH", "OIH", "NCH"))        # (B, F, L_j)
        y = jax.nn.relu(y + b[None, :, None])
        pooled.append(jnp.max(y, axis=2))                   # (B, F)
    cat = jnp.concatenate(pooled, axis=1)
    return cat @ fc_w.T + fc_b


if __name__ == "__main__":
    # Module hyper-parameters (small, consistent with TextCNN.__init__).
    embedding_dim = 32
    n_filters = 8
    filter_sizes = (3, 4, 5)
    output_dim = 4
    batch, seq_len = 16, 16
    batch_tile = 8

    key = jax.random.PRNGKey(0)
    keys = jax.random.split(key, 8)

    # Conv1d weights: xavier_uniform_, bias = 0.1  (torch shape: (F, E, fs)).
    conv_ws, conv_bs = [], []
    for i, fs in enumerate(filter_sizes):
        fan_in, fan_out = embedding_dim * fs, n_filters * fs
        bound = math.sqrt(6.0 / (fan_in + fan_out))
        conv_ws.append(jax.random.uniform(keys[i], (n_filters, embedding_dim, fs),
                                          jnp.float32, -bound, bound))
        conv_bs.append(jnp.full((n_filters,), 0.1, jnp.float32))

    # Linear: kaiming_normal_ weight, zero bias. (torch shape: (O, 3*F)).
    fc_in = len(filter_sizes) * n_filters
    fc_w = jax.random.normal(keys[3], (output_dim, fc_in), jnp.float32) * math.sqrt(2.0 / fc_in)
    fc_b = jnp.zeros((output_dim,), jnp.float32)

    # Input: (batch, seq_len, embedding_dim), as TextCNN.forward expects.
    x = jax.random.normal(keys[4], (batch, seq_len, embedding_dim), jnp.float32)

    ref = reference_forward(x, conv_ws, conv_bs, fc_w, fc_b, filter_sizes)

    # f32 path: exact parity with the PyTorch-equivalent reference.
    out = textcnn_forward(x, conv_ws, conv_bs, fc_w, fc_b, filter_sizes,
                          batch_tile=batch_tile, compute_dtype=jnp.float32)
    out = jax.block_until_ready(out)
    assert out.shape == (batch, output_dim)
    assert jnp.allclose(out, ref, atol=1e-4, rtol=1e-4), (out, ref)

    # bf16 MXU path (v6e/v7x recommendation): f32 accumulation, loose tolerance.
    out_bf16 = textcnn_forward(x, conv_ws, conv_bs, fc_w, fc_b, filter_sizes,
                               batch_tile=batch_tile, compute_dtype=jnp.bfloat16)
    out_bf16 = jax.block_until_ready(out_bf16)
    assert jnp.allclose(out_bf16, ref, atol=0.25, rtol=0.05), (out_bf16, ref)

    print("KERNEL_OK")
</pallas_src>

<mosaic_0001>
module attributes {stable_mosaic.version = 11 : i64} {
  func.func @textcnn_kernel(%arg0: i32, %arg1: memref<8x14x160xf32, #tpu.memory_space<vmem>>, %arg2: memref<160x128xf32, #tpu.memory_space<vmem>>, %arg3: memref<1x128xf32, #tpu.memory_space<vmem>>, %arg4: memref<14x128xf32, #tpu.memory_space<vmem>>, %arg5: memref<128x128xf32, #tpu.memory_space<vmem>>, %arg6: memref<1x128xf32, #tpu.memory_space<vmem>>, %arg7: memref<8x128xf32, #tpu.memory_space<vmem>>) attributes {dimension_semantics = [#tpu.dimension_semantics<parallel>], iteration_bounds = array<i64: 2>, scalar_prefetch = 0 : i64, scratch_operands = 0 : i64, tpu.core_type = #tpu.core_type<tc>, window_params = [{transform_indices = @transform_0, window_bounds = array<i64: 8, 14, 160>}, {pipeline_mode = #tpu.pipeline_mode<synchronous>, transform_indices = @transform_1, window_bounds = array<i64: 160, 128>}, {pipeline_mode = #tpu.pipeline_mode<synchronous>, transform_indices = @transform_2, window_bounds = array<i64: 1, 128>}, {pipeline_mode = #tpu.pipeline_mode<synchronous>, transform_indices = @transform_3, window_bounds = array<i64: 14, 128>}, {pipeline_mode = #tpu.pipeline_mode<synchronous>, transform_indices = @transform_4, window_bounds = array<i64: 128, 128>}, {pipeline_mode = #tpu.pipeline_mode<synchronous>, transform_indices = @transform_5, window_bounds = array<i64: 1, 128>}, {transform_indices = @transform_6, window_bounds = array<i64: 8, 128>}]} {
    %c0 = arith.constant 0 : index
    %c0_0 = arith.constant 0 : index
    %c0_1 = arith.constant 0 : index
    %0 = vector.load %arg1[%c0, %c0_0, %c0_1] : memref<8x14x160xf32, #tpu.memory_space<vmem>>, vector<8x14x160xf32>
    %c0_2 = arith.constant 0 : index
    %c0_3 = arith.constant 0 : index
    %1 = vector.load %arg2[%c0_2, %c0_3] : memref<160x128xf32, #tpu.memory_space<vmem>>, vector<160x128xf32>
    %cst = arith.constant dense<0.000000e+00> : vector<8x14x128xf32>
    %2 = tpu.matmul %0, %1, %cst {dimension_numbers = #tpu.dot_dimension_numbers<[2], [0], [0, 1], [1], [0, 0, 0, 1, 1, 1], [], []>} : vector<8x14x160xf32>, vector<160x128xf32>, vector<8x14x128xf32> -> vector<8x14x128xf32>
    %c0_4 = arith.constant 0 : index
    %c0_5 = arith.constant 0 : index
    %3 = vector.load %arg3[%c0_4, %c0_5] : memref<1x128xf32, #tpu.memory_space<vmem>>, vector<1x128xf32>
    %4 = vector.shape_cast %3 : vector<1x128xf32> to vector<1x1x128xf32>
    %5 = vector.broadcast %4 : vector<1x1x128xf32> to vector<8x14x128xf32>
    %6 = arith.addf %2, %5 : vector<8x14x128xf32>
    %cst_6 = arith.constant 0.000000e+00 : f32
    %7 = vector.broadcast %cst_6 : f32 to vector<8x14x128xf32>
    %8 = arith.maximumf %6, %7 : vector<8x14x128xf32>
    %c0_7 = arith.constant 0 : index
    %c0_8 = arith.constant 0 : index
    %9 = vector.load %arg4[%c0_7, %c0_8] : memref<14x128xf32, #tpu.memory_space<vmem>>, vector<14x128xf32>
    %10 = vector.shape_cast %9 : vector<14x128xf32> to vector<1x14x128xf32>
    %11 = vector.broadcast %10 : vector<1x14x128xf32> to vector<8x14x128xf32>
    %12 = arith.mulf %8, %11 : vector<8x14x128xf32>
    %cst_9 = arith.constant dense<0xFF800000> : vector<8x128xf32>
    %13 = vector.multi_reduction <maximumf>, %12, %cst_9 [1] : vector<8x14x128xf32> to vector<8x128xf32>
    %c0_10 = arith.constant 0 : index
    %c0_11 = arith.constant 0 : index
    %14 = vector.load %arg5[%c0_10, %c0_11] : memref<128x128xf32, #tpu.memory_space<vmem>>, vector<128x128xf32>
    %cst_12 = arith.constant dense<0.000000e+00> : vector<8x128xf32>
    %15 = tpu.matmul %13, %14, %cst_12 {dimension_numbers = #tpu.dot_dimension_numbers<[1], [0], [0], [1], [0, 0, 1, 1], [], []>} : vector<8x128xf32>, vector<128x128xf32>, vector<8x128xf32> -> vector<8x128xf32>
    %c0_13 = arith.constant 0 : index
    %c0_14 = arith.constant 0 : index
    %16 = vector.load %arg6[%c0_13, %c0_14] : memref<1x128xf32, #tpu.memory_space<vmem>>, vector<1x128xf32>
    %17 = vector.broadcast %16 : vector<1x128xf32> to vector<8x128xf32>
    %18 = arith.addf %15, %17 : vector<8x128xf32>
    %c0_15 = arith.constant 0 : index
    %c0_16 = arith.constant 0 : index
    %19 = vector.load %arg7[%c0_15, %c0_16] : memref<8x128xf32, #tpu.memory_space<vmem>>, vector<8x128xf32>
    tpu.vector_store %arg7[%c0_15, %c0_16], %18 {strides = array<i32>} : memref<8x128xf32, #tpu.memory_space<vmem>>, vector<8x128xf32>,
    return
  }
  func.func @transform_0(%arg0: i32) -> (i32, i32, i32) {
    %c0_i32 = arith.constant 0 : i32
    %c0_i32_0 = arith.constant 0 : i32
    %c0_i32_1 = arith.constant 0 : i32
    return %arg0, %c0_i32, %c0_i32_0 : i32, i32, i32
  }
  func.func @transform_1(%arg0: i32) -> (i32, i32) {
    %c0_i32 = arith.constant 0 : i32
    %c0_i32_0 = arith.constant 0 : i32
    %c0_i32_1 = arith.constant 0 : i32
    return %c0_i32, %c0_i32_0 : i32, i32
  }
  func.func @transform_2(%arg0: i32) -> (i32, i32) {
    %c0_i32 = arith.constant 0 : i32
    %c0_i32_0 = arith.constant 0 : i32
    %c0_i32_1 = arith.constant 0 : i32
    return %c0_i32, %c0_i32_0 : i32, i32
  }
  func.func @transform_3(%arg0: i32) -> (i32, i32) {
    %c0_i32 = arith.constant 0 : i32
    %c0_i32_0 = arith.constant 0 : i32
    %c0_i32_1 = arith.constant 0 : i32
    return %c0_i32, %c0_i32_0 : i32, i32
  }
  func.func @transform_4(%arg0: i32) -> (i32, i32) {
    %c0_i32 = arith.constant 0 : i32
    %c0_i32_0 = arith.constant 0 : i32
    %c0_i32_1 = arith.constant 0 : i32
    return %c0_i32, %c0_i32_0 : i32, i32
  }
  func.func @transform_5(%arg0: i32) -> (i32, i32) {
    %c0_i32 = arith.constant 0 : i32
    %c0_i32_0 = arith.constant 0 : i32
    %c0_i32_1 = arith.constant 0 : i32
    return %c0_i32, %c0_i32_0 : i32, i32
  }
  func.func @transform_6(%arg0: i32) -> (i32, i32) {
    %c0_i32 = arith.constant 0 : i32
    %c0_i32_0 = arith.constant 0 : i32
    return %arg0, %c0_i32 : i32, i32
  }
}

</mosaic_0001>

<bundles_post_ra>
// kernel: tpu_custom_call.1
= control target key start
LH: loop header
LB: loop body
LE: loop exit
PB: predicated region body
PF: predicated region fallthrough
CT: control target
= control target key end

     0   :  { %11 = vsyncpa [#allocation3], 0  ;;  %s3050_s0 = inlined_call_operand.vmem [shape: f32[16,14,160], index: 0, kind: input, shape index: {}]   ;;  %s3051_s1 = inlined_call_operand.vmem [shape: f32[160,128], index: 1, kind: input, shape index: {}]   ;;  %s3052_s2 = inlined_call_operand.vmem [shape: f32[1,128], index: 2, kind: input, shape index: {}]   ;;  %s3053_s3 = inlined_call_operand.vmem [shape: f32[14,128], index: 3, kind: input, shape index: {}]   ;;  %s3054_s4 = inlined_call_operand.vmem [shape: f32[128,128], index: 4, kind: input, shape index: {}]   ;;  %s3055_s5 = inlined_call_operand.vmem [shape: f32[1,128], index: 5, kind: input, shape index: {}]   ;;  %s3056_s6 = inlined_call_operand.hbm [shape: f32[16,128], index: 6, kind: output, shape index: {}]  }
   0x1   :  { %13 = vsyncpa [#allocation3 + $0x1], 0  ;;  %s2455_s21 = smov 0   ;;  %s2457_s22 = smov 0  }
   0x2   :  { %s2459_s23 = smov 0   ;;  %s2461_s24 = smov 0  }
   0x3 LB: > { %s2476_s25 = sadd.s32 4294967295, %s2414_s24   ;;  %s2181_s26 = sadd.s32 4294967294, %s2414_s24   ;;  %s2414_s24 = sphi %s2461_s24, %s3062_s24   ;;  %s2410_s23 = sphi %s2459_s23, %s3061_s23   ;;  %s2406_s22 = sphi %s2457_s22, %s3060_s22   ;;  %s2402_s21 = sphi %s2455_s21, %s3059_s21  }
   0x4   : > { %s2480_s27 = sadd.s32 1, %s2414_s24   ;;  %s157_s28 = sadd.s32 1, %s2410_s23 }
   0x5   : > { %s154_s29 = ssub.s32 %s2414_s24, %s2480_s27  ;;  %p167_p0 = scmp.ne.s32.totalorder %s2410_s23, %s2406_s22 }
   0x6   : > { %p155_p1 = scmp.eq.s32.totalorder %s154_s29, 0  ;;  %p168_p2 = scmp.eq.s32.totalorder %s2476_s25, 1 }
   0x7   : > { %p173_p3 = scmp.ne.s32.totalorder %s2406_s22, %s2402_s21  ;;  %p174_p4 = scmp.eq.s32.totalorder %s2181_s26, 1 }
   0x8   : > { %s2491_s30 = scalar_select %p155_p1, %s2410_s23, %s157_s28  }
   0x9   : > { %p2493_p5 = por %p168_p2, %p167_p0  ;;  %p2497_p6 = por %p174_p4, %p173_p3 }
   0xa   : > { %p2184_p7 = scmp.ge.s32.totalorder %s2414_s24, 1  ;;  %p217_p8 = scmp.lt.s32.totalorder %s2414_s24, 3 }
   0xc   : > { %p218_p9 = pnand %p2184_p7, %p217_p8 }
   0xd   : > { %s2186_s11 = sshll.u32 (!%p218_p9), %s2476_s25, 3  ;;  %s2206_s28 = sshll.u32 (!%p218_p9), %s2476_s25, 7 }
   0xe   : > { %221 = sbr.rel (%p218_p9) target bundleno = 561 (0x231), region = 44  ;;  %p249_p10 = scmp.lt.s32.totalorder (!%p218_p9), %s2186_s11, 15 }
   0xf   : > { %s3015_s12 = scalar_lea.hbm (!%p218_p9), %s3056_s6, %s2206_s28  ;;  %s2419_s15 = smov (!%p218_p9), [#allocation2]  }
  0x10   : > { %s2358_s25 = sshll.u32 (!%p218_p9), %s2419_s15, 4  ;;  %s2359_s25 = int_to_ptr.vmem [resolvable:$false] %s2358_s25 }
  0x11   : > { %s2360_s16 = scalar_lea.vmem (!%p218_p9), %s2359_s25, 256 }
  0x13   : > { %v302_v0 = vld [vmem:[%s3051_s1 + $0x78] sm:$0xff]  ;;  %v350_v1 = vlaneseq  ;;  %v2416_v2 = vmov 0.0   ;;  %v301_v3 = vld [vmem:[%s3051_s1 + $0x70] sm:$0xff]  ;;  %v2417_v4 = vmov 1983009808   ;;  %v300_v7 = vld [vmem:[%s3051_s1 + $0x68] sm:$0xff] }
  0x14   : > { %991 = vmatprep.subr.mxu0 %v2416_v2  ;;  %2227 = vmatprep.subr.mxu1 %v2416_v2  ;;  %v348_v5 = vunpack.c.l.s4 %v2417_v4  ;;  %s3064_s11 = smov (!%p249_p10, %s2186_s11), 15  ;;  %v299_v9 = vld [vmem:[%s3051_s1 + $0x60] sm:$0xff]  ;;  %v298_v10 = vld [vmem:[%s3051_s1 + $0x58] sm:$0xff]  ;;  %v297_v14 = vld [vmem:[%s3051_s1 + $0x50] sm:$0xff]  ;;  %vm962_vm0 = vcmask 261120   ;;  %vm2418_vm1 = vmmov 0  }
  0x15   : > { %992 = vmatpush1.msra.mxu0 %v302_v0  ;;  %v351_v6 = vshrl.u32 %v350_v1, 7  ;;  %s2209_s18 = sshll.u32 %s3064_s11, 5  ;;  %v296_v17 = vld [vmem:[%s3051_s1 + $0x48] sm:$0xff]  ;;  %v295_v20 = vld [vmem:[%s3051_s1 + $0x40] sm:$0xff]  ;;  %v294_v23 = vld [vmem:[%s3051_s1 + $0x38] sm:$0xff]  ;;  %2259 = vmatprep.mubr.msk.f32.mxu1 %vm2418_vm1, %v2416_v2  ;;  %vm1926_vm2 = vcmask 1045504  }
  0x16   : > { %993 = vmatprep.subr.mxu0 %v2416_v2  ;;  %v349_v8 = vunpack.c.0.s8 %v348_v5  ;;  %s2526_s29 = scalar_lea.vmem %s3050_s0, %s2209_s18  ;;  %v293_v26 = vld [vmem:[%s3051_s1 + $0x30] sm:$0xff]  ;;  %v292_v27 = vld [vmem:[%s3051_s1 + $0x28] sm:$0xff]  ;;  %v291_v30 = vld [vmem:[%s3051_s1 + $0x20] sm:$0xff]  ;;  %vm2022_vm3 = vcmask 1041409   ;;  %vm2024_vm4 = vcmask 1042434   ;;  %vm2026_vm5 = vcmask 1043459  }
  0x17   : > { %994 = vmatpush1.msra.mxu0 %v301_v3  ;;  %v2304_v12 = vld [vmem:[%s2526_s29] ss:$8 sps:$4 sm:$0xff]   ;;  %v2306_v13 = vld [vmem:[%s2526_s29 + $0x4] ss:$8 sps:$4 sm:$0xff]   ;;  %v2307_v29 = vld [vmem:[%s2526_s29 + $0x10] ss:$8 sps:$4 sm:$0xff]  }
  0x18   : > { %995 = vmatprep.subr.mxu0 %v2416_v2  ;;  %v2528_v11 = vsub.s32 %v349_v8, %v351_v6  ;;  %v2312_v31 = vld [vmem:[%s2526_s29 + $0x24] ss:$8 sps:$4 sm:$0xff]   ;;  %v2309_v32 = vld [vmem:[%s2526_s29 + $0x14] ss:$8 sps:$4 sm:$0x33]   ;;  %vm2028_vm6 = vcmask 1044484  }
  0x19   : > { %996 = vmatpush1.msra.mxu0 %v300_v7  ;;  %v2310_v34 = vld [vmem:[%s2526_s29 + $0x20] ss:$8 sps:$4 sm:$0xff]   ;;  %v290_v35 = vld [vmem:[%s3051_s1 + $0x18] sm:$0xff]  ;;  %v289_v36 = vld [vmem:[%s3051_s1 + $0x10] sm:$0xff]  ;;  %vm2030_vm7 = vcmask 1045509   ;;  %vm2032_vm8 = vcmask 1046534  }
  0x1a   : > { %997 = vmatprep.subr.mxu0 %v2416_v2  ;;  %v353_v15 = vrot.slane %v2304_v12, %v2528_v11  ;;  %v360_v16 = vrot.slane %v2306_v13, %v2528_v11  ;;  %v371_v33 = vrot.slane %v2307_v29, %v2528_v11  ;;  %v395_v37 = vrot.slane %v2312_v31, %v2528_v11  ;;  %v2313_v38 = vld [vmem:[%s2526_s29 + $0x30] ss:$8 sps:$4 sm:$0xff]   ;;  %v2316_v42 = vld [vmem:[%s2526_s29 + $0x40] ss:$8 sps:$4 sm:$0xff]   ;;  %v2318_v49 = vld [vmem:[%s2526_s29 + $0x44] ss:$8 sps:$4 sm:$0xff]  }
  0x1b   : > { %998 = vmatpush1.msra.mxu0 %v299_v9  ;;  %v378_v39 = vrot.slane %v2309_v32, %v2528_v11  ;;  %v388_v41 = vrot.slane %v2310_v34, %v2528_v11  ;;  %v288_v43 = vld [vmem:[%s3051_s1 + $0x8] sm:$0xff]  ;;  %v2315_v44 = vld [vmem:[%s2526_s29 + $0x34] ss:$8 sps:$4 sm:$0x33]   ;;  %v287_v45 = vld [vmem:[%s3051_s1] sm:$0xff]  ;;  %v406_v48 = vrot.slane %v2313_v38, %v2528_v11  ;;  %v423_v52 = vrot.slane %v2316_v42, %v2528_v11  ;;  %s245_s18 = sand.u32 1, %s2406_s22  }
  0x1c   : > { %999 = vmatprep.subr.mxu0 %v2416_v2  ;;  %v361_v18 = vcombine.high %v353_v15, %v353_v15  ;;  %v362_v19 = vcombine.high %v360_v16, %v360_v16  ;;  %v379_v40 = vcombine.high %v371_v33, %v371_v33  ;;  %v397_v47 = vcombine.high %v395_v37, %v395_v37  ;;  %v2319_v53 = vld [vmem:[%s2526_s29 + $0x50] ss:$8 sps:$4 sm:$0xff]   ;;  %v2322_v1 = vld [vmem:[%s2526_s29 + $0x60] ss:$8 sps:$4 sm:$0xff]   ;;  %s2185_s19 = sshll.u32 %s245_s18, 3  ;;  %s2109_s13 = scalar_lea.sflag [#allocation3], %s245_s18 }
  0x1d   : > { %1000 = vmatpush1.msra.mxu0 %v298_v10  ;;  %v396_v46 = vcombine.high %v388_v41, %v388_v41  ;;  %v661_v51 = vcombine.low %v378_v39, %v388_v41  ;;  %v306_v54 = vld [vmem:[%s3051_s1 + $0x98] sm:$0xff]  ;;  %v413_v55 = vrot.slane %v2315_v44, %v2528_v11  ;;  %v414_v56 = vcombine.high %v406_v48, %v406_v48  ;;  %v305_v57 = vld [vmem:[%s3051_s1 + $0x90] sm:$0xff]  ;;  %v304_v3 = vld [vmem:[%s3051_s1 + $0x88] sm:$0xff]  ;;  %s247_s9 = scalar_lea.vmem [#allocation2], %s2185_s19 }
  0x1e   : > { %1001 = vmatprep.subr.mxu0 %v2416_v2  ;;  %v642_v21 = vcombine.low %v353_v15, %v361_v18  ;;  %v643_v22 = vcombine.low %v360_v16, %v362_v19  ;;  %v660_v50 = vcombine.low %v371_v33, %v379_v40  ;;  %v679_v59 = vcombine.low %v397_v47, %v406_v48  ;;  %v303_v5 = vld [vmem:[%s3051_s1 + $0x80] sm:$0xff]  ;;  %v2321_v10 = vld [vmem:[%s2526_s29 + $0x54] ss:$8 sps:$4 sm:$0x33]   ;;  %v2325_v12 = vld [vmem:[%s2526_s29 + $0x70] ss:$8 sps:$4 sm:$0xff]  }
  0x1f   : > { %1002 = vmatpush1.msra.mxu0 %v297_v14  ;;  %v678_v58 = vcombine.low %v396_v46, %v395_v37  ;;  %v430_v60 = vrot.slane %v2318_v49, %v2528_v11  ;;  %v675_v62 = vrot.slane %v661_v51, %v2528_v11  ;;  %v431_v63 = vcombine.high %v423_v52, %v423_v52  ;;  %v2324_v16 = vld [vmem:[%s2526_s29 + $0x64] ss:$8 sps:$4 sm:$0xff]   ;;  %v2331_v34 = vld [vmem:[%s2526_s29 + $0x90] ss:$8 sps:$4 sm:$0xff]   ;;  %v2334_v49 = vld [vmem:[%s2526_s29 + $0xa0] ss:$8 sps:$4 sm:$0xff]  }
  0x20   : > { %1003 = vmatprep.subr.mxu0 %v2416_v2  ;;  %v2552_v24 = vrot.slane %v642_v21, %v2528_v11  ;;  %v2555_v25 = vrot.slane %v643_v22, %v2528_v11  ;;  %v668_v61 = vrot.slane %v660_v50, %v2528_v11  ;;  %v441_v0 = vrot.slane %v2319_v53, %v2528_v11  ;;  %v2333_v48 = vld [vmem:[%s2526_s29 + $0x94] ss:$8 sps:$4 sm:$0x33]   ;;  %s2122_s10 = sshll.u32 %s247_s9, 4  ;;  %s2123_s10 = int_to_ptr.vmem [resolvable:$true] %s2122_s10 }
  0x21   : > { %1004 = vmatpush1.msra.mxu0 %v296_v17  ;;  %v696_v4 = vcombine.low %v414_v56, %v413_v55  ;;  %v686_v7 = vrot.slane %v678_v58, %v2528_v11  ;;  %v693_v8 = vrot.slane %v679_v59, %v2528_v11  ;;  %v432_v9 = vcombine.high %v430_v60, %v430_v60  ;;  %s2354_s14 = scalar_lea.vmem %s2123_s10, 128  ;;  %p2361_p0 = scmp.lt.s32.totalorder %s2123_s10, %s2359_s25 }
  0x22   : > { %1005 = vmatprep.subr.mxu0 %v2416_v2  ;;  %v659_v28 = vcombine.high %v2552_v24, %v2555_v25  ;;  %v658_v6 = vcombine.low %v2552_v24, %v2555_v25  ;;  %v677_v13 = vcombine.high %v668_v61, %v675_v62  ;;  %v697_v14 = vcombine.low %v423_v52, %v431_v63  ;;  %v2328_v25 = vld [vmem:[%s2526_s29 + $0x80] ss:$8 sps:$4 sm:$0xff]   ;;  %p2355_p11 = scmp.ne.s32.totalorder %s2123_s10, %s2354_s14  ;;  %p2362_p1 = scmp.lt.s32.totalorder %s2360_s16, %s2354_s14 }
  0x23   : > { %1006 = vmatpush1.msra.mxu0 %v295_v20  ;;  %v449_v15 = vcombine.high %v441_v0, %v441_v0  ;;  %v458_v17 = vrot.slane %v2322_v1, %v2528_v11  ;;  %v676_v18 = vcombine.low %v668_v61, %v675_v62  ;;  %v704_v19 = vrot.slane %v696_v4, %v2528_v11  ;;  %v2327_v20 = vld [vmem:[%s2526_s29 + $0x74] ss:$8 sps:$4 sm:$0x33]   ;;  %v2340_v62 = vld [vmem:[%s2526_s29 + $0xc0] ss:$8 sps:$4 sm:$0xff]  }
  0x24   : > { %1007 = vmatprep.subr.mxu0 %v2416_v2  ;;  %2190 = vmatprep.mubr.msk.f32.mxu0 %vm962_vm0, %v659_v28  ;;  %v695_v21 = vcombine.high %v686_v7, %v693_v8  ;;  %v714_v22 = vcombine.low %v430_v60, %v432_v9  ;;  %v476_v24 = vrot.slane %v2325_v12, %v2528_v11  ;;  %v2342_v12 = vld [vmem:[%s2526_s29 + $0xc4] ss:$8 sps:$4 sm:$0xff]   ;;  %vm2034_vm9 = vcmask 1047559   ;;  %p2356_p12 = pnand %p2355_p11, %p2493_p5  ;;  %p2363_p2 = por %p2362_p1, %p2361_p0 }
  0x25   : > { %1008 = vmatpush1.msra.mxu0 %v294_v23  ;;  %v448_v23 = vrot.slane %v2321_v10, %v2528_v11  ;;  %v465_v28 = vrot.slane %v2324_v16, %v2528_v11  ;;  %v466_v29 = vcombine.high %v458_v17, %v458_v17  ;;  %v694_v31 = vcombine.low %v686_v7, %v693_v8 }
  0x26   : > { %1009 = vmatprep.subr.mxu0 %v2416_v2  ;;  %v483_v33 = vrot.slane %v2327_v20, %v2528_v11  ;;  %v484_v37 = vcombine.high %v476_v24, %v476_v24  ;;  %v493_v38 = vrot.slane %v2328_v25, %v2528_v11  ;;  %v511_v44 = vrot.slane %v2331_v34, %v2528_v11  ;;  %p2357_p13 = pneg %p2356_p12 }
  0x27   : > { %1010 = vmatpush1.msra.mxu0 %v293_v26  ;;  %v711_v26 = vrot.slane %v697_v14, %v2528_v11  ;;  %v467_v32 = vcombine.high %v465_v28, %v465_v28  ;;  %v733_v41 = vcombine.low %v466_v29, %v465_v28  ;;  %v518_v60 = vrot.slane %v2333_v48, %v2528_v11  ;;  %v2346_v29 = vld [vmem:[%s2526_s29 + $0xe0] ss:$8 sps:$4 sm:$0xff]  }
  0x28   : > { %1011 = vmatprep.subr.mxu0 %v2416_v2  ;;  %v751_v46 = vcombine.low %v484_v37, %v483_v33  ;;  %v501_v47 = vcombine.high %v493_v38, %v493_v38  ;;  %v528_v61 = vrot.slane %v2334_v49, %v2528_v11  ;;  %v563_v10 = vrot.slane %v2340_v62, %v2528_v11  ;;  %p2364_p3 = pnand %p2363_p2, %p2357_p13 }
  0x29   : > { %1012 = vmatpush1.msra.mxu0 %v292_v27  ;;  %v715_v27 = vcombine.low %v441_v0, %v449_v15  ;;  %v713_v39 = vcombine.high %v704_v19, %v711_v26  ;;  %v747_v52 = vrot.slane %v733_v41, %v2528_v11  ;;  %v2349_v41 = vld [vmem:[%s2526_s29 + $0xf0] ss:$8 sps:$4 sm:$0xff]  }
  0x2a   : > { %1013 = vmatprep.subr.mxu0 %v2416_v2  ;;  %v765_v58 = vrot.slane %v751_v46, %v2528_v11  ;;  %v768_v59 = vcombine.low %v493_v38, %v501_v47  ;;  %v787_v9 = vcombine.low %v518_v60, %v528_v61  ;;  %v536_v14 = vcombine.high %v528_v61, %v528_v61 }
  0x2b   : > { %1014 = vmatpush1.msra.mxu0 %v291_v30  ;;  %v2330_v30 = vld [vmem:[%s2526_s29 + $0x84] ss:$8 sps:$4 sm:$0xff]   ;;  %v729_v40 = vrot.slane %v715_v27, %v2528_v11 }
  0x2c   : > { %1015 = vmatprep.subr.mxu0 %v2416_v2  ;;  %v500_v42 = vrot.slane %v2330_v30, %v2528_v11  ;;  %v776_v8 = vrot.slane %v768_v59, %v2528_v11 }
  0x2d   : > { %1016 = vmatpush1.msra.mxu0 %v290_v35  ;;  %v722_v35 = vrot.slane %v714_v22, %v2528_v11 }
  0x2e   : > { %1017 = vmatprep.subr.mxu0 %v2416_v2  ;;  %v502_v53 = vcombine.high %v500_v42, %v500_v42 }
  0x2f   : > { %1018 = vmatpush1.msra.mxu0 %v289_v36  ;;  %v732_v36 = vcombine.low %v448_v23, %v458_v17  ;;  %v731_v50 = vcombine.high %v722_v35, %v729_v40  ;;  %v730_v55 = vcombine.low %v722_v35, %v729_v40  ;;  %v2343_v17 = vld [vmem:[%s2526_s29 + $0xd0] ss:$8 sps:$4 sm:$0xff]   ;;  %v571_v23 = vcombine.high %v563_v10, %v563_v10 }
  0x30   : > { %1019 = vmatprep.subr.mxu0 %v2416_v2  ;;  %v769_v0 = vcombine.low %v500_v42, %v502_v53  ;;  %v581_v28 = vrot.slane %v2343_v17, %v2528_v11  ;;  %v598_v40 = vrot.slane %v2346_v29, %v2528_v11  ;;  %v2002_v17 = vld [vmem:[%s3054_s4 + $0x58] sm:$0xff]  ;;  %v2189_v29 = vld [vmem:[%s3052_s2] ss:$0 sm:$0xff] }
  0x31   : > { %1020 = vmatpush1.msra.mxu0 %v288_v43  ;;  %v750_v43 = vcombine.low %v467_v32, %v476_v24  ;;  %v740_v51 = vrot.slane %v732_v36, %v2528_v11  ;;  %v570_v24 = vrot.slane %v2342_v12, %v2528_v11  ;;  %v823_v34 = vcombine.low %v563_v10, %v571_v23  ;;  %v2348_v36 = vld [vmem:[%s2526_s29 + $0xe4] ss:$8 sps:$4 sm:$0xff]  }
  0x32   : > { %1021 = vmatprep.subr.mxu0 %v2416_v2  ;;  %v605_v47 = vrot.slane %v2348_v36, %v2528_v11  ;;  %v1996_v23 = vld [vmem:[%s3054_s4 + $0x28] sm:$0xff] }
  0x33   : > { %1022 = vmatpush1.msra.mxu0 %v287_v45  ;;  %v712_v45 = vcombine.low %v704_v19, %v711_v26  ;;  %v758_v56 = vrot.slane %v750_v43, %v2528_v11  ;;  %v749_v63 = vcombine.high %v740_v51, %v747_v52  ;;  %v748_v4 = vcombine.low %v740_v51, %v747_v52  ;;  %v2351_v51 = vld [vmem:[%s2526_s29 + $0xf4] ss:$8 sps:$4 sm:$0x33]  }
  0x34   : > { %1047 = vmatprep.subr.mxu0 %v2416_v2  ;;  %v572_v35 = vcombine.high %v570_v24, %v570_v24  ;;  %v616_v52 = vrot.slane %v2349_v41, %v2528_v11  ;;  %v623_v60 = vrot.slane %v2351_v51, %v2528_v11 }
  0x35   : > { %1048 = vmatpush2.msra.mxu0 %v306_v54  ;;  %v2336_v54 = vld [vmem:[%s2526_s29 + $0xa4] ss:$8 sps:$4 sm:$0xff]   ;;  %v767_v7 = vcombine.high %v758_v56, %v765_v58 }
  0x36   : > { %1049 = vmatprep.subr.mxu0 %v2416_v2  ;;  %v535_v1 = vrot.slane %v2336_v54, %v2528_v11  ;;  %v840_v46 = vcombine.low %v570_v24, %v572_v35  ;;  %v624_v61 = vcombine.high %v616_v52, %v616_v52  ;;  %v1995_v24 = vld [vmem:[%s3054_s4 + $0x20] sm:$0xff] }
  0x37   : > { %1050 = vmatpush2.msra.mxu0 %v305_v57  ;;  %v519_v57 = vcombine.high %v511_v44, %v511_v44 }
  0x38   : > { %1051 = vmatprep.subr.mxu0 %v2416_v2  ;;  %v537_v15 = vcombine.high %v535_v1, %v535_v1  ;;  %v804_v26 = vcombine.low %v536_v14, %v535_v1  ;;  %v2005_v14 = vld [vmem:[%s3054_s4 + $0x70] sm:$0xff] }
  0x39   : > { %1052 = vmatpush2.msra.mxu0 %v304_v3  ;;  %v2337_v3 = vld [vmem:[%s2526_s29 + $0xb0] ss:$8 sps:$4 sm:$0xff]  }
  0x3a   : > { %1053 = vmatprep.subr.mxu0 %v2416_v2  ;;  %v546_v16 = vrot.slane %v2337_v3, %v2528_v11  ;;  %v812_v37 = vrot.slane %v804_v26, %v2528_v11  ;;  %v1993_v26 = vld [vmem:[%s3054_s4 + $0x10] sm:$0xff] }
  0x3b   : > { %1054 = vmatpush2.msra.mxu0 %v303_v5  ;;  %v786_v5 = vcombine.low %v511_v44, %v519_v57  ;;  %v607_v57 = vcombine.high %v605_v47, %v605_v47 }
  0x3c   : > { %1056 = vmatmul.mubr.f32.vlgmr.msra.gmra.mxu0 %v658_v6  ;;  %v2339_v6 = vld [vmem:[%s2526_s29 + $0xb4] ss:$8 sps:$4 sm:$0x33]   ;;  %v554_v22 = vcombine.high %v546_v16, %v546_v16  ;;  %v805_v27 = vcombine.low %v537_v15, %v546_v16  ;;  %v2004_v15 = vld [vmem:[%s3054_s4 + $0x68] sm:$0xff]  ;;  %v2003_v16 = vld [vmem:[%s3054_s4 + $0x60] sm:$0xff] }
  0x3d   : > { %2191 = vmatprep.mubr.msk.f32.mxu0 %vm962_vm0, %v677_v13  ;;  %v783_v13 = vrot.slane %v769_v0, %v2528_v11  ;;  %v794_v19 = vrot.slane %v786_v5, %v2528_v11  ;;  %v553_v20 = vrot.slane %v2339_v6, %v2528_v11  ;;  %v876_v3 = vcombine.low %v607_v57, %v616_v52 }
  0x3e   : > { %v819_v38 = vrot.slane %v805_v27, %v2528_v11  ;;  %v1992_v27 = vld [vmem:[%s3054_s4 + $0x8] sm:$0xff] }
  0x3f   : > { %v785_v25 = vcombine.high %v776_v8, %v783_v13  ;;  %v784_v30 = vcombine.low %v776_v8, %v783_v13  ;;  %v822_v33 = vcombine.low %v554_v22, %v553_v20  ;;  %v2006_v13 = vld [vmem:[%s3054_s4 + $0x78] sm:$0xff]  ;;  %v1999_v20 = vld [vmem:[%s3054_s4 + $0x40] sm:$0xff]  ;;  %v1997_v22 = vld [vmem:[%s3054_s4 + $0x30] sm:$0xff] }
  0x40   : > { %1061 = vmatmul.mubr.f32.gmra.mxu0 %v676_v18  ;;  %v766_v18 = vcombine.low %v758_v56, %v765_v58  ;;  %v821_v48 = vcombine.high %v812_v37, %v819_v38  ;;  %v820_v53 = vcombine.low %v812_v37, %v819_v38  ;;  %2228 = vmatpush3.msra.mxu1 %v2006_v13 }
  0x41   : > { %2192 = vmatprep.mubr.msk.f32.mxu0 %vm962_vm0, %v695_v21  ;;  %v801_v21 = vrot.slane %v787_v9, %v2528_v11  ;;  %v830_v44 = vrot.slane %v822_v33, %v2528_v11  ;;  %2229 = vmatprep.subr.mxu1 %v2416_v2 }
  0x42   : > { %2230 = vmatpush3.msra.mxu1 %v2005_v14 }
  0x43   : > { %v803_v32 = vcombine.high %v794_v19, %v801_v21  ;;  %v802_v42 = vcombine.low %v794_v19, %v801_v21  ;;  %2231 = vmatprep.subr.mxu1 %v2416_v2  ;;  %v2000_v19 = vld [vmem:[%s3054_s4 + $0x48] sm:$0xff]  ;;  %v1998_v21 = vld [vmem:[%s3054_s4 + $0x38] sm:$0xff] }
  0x44   : > { %1066 = vmatmul.mubr.f32.gmra.mxu0 %v694_v31  ;;  %v2345_v31 = vld [vmem:[%s2526_s29 + $0xd4] ss:$8 sps:$4 sm:$0x33]   ;;  %2232 = vmatpush3.msra.mxu1 %v2004_v15 }
  0x45   : > { %2193 = vmatprep.mubr.msk.f32.mxu0 %vm962_vm0, %v713_v39  ;;  %v589_v39 = vcombine.high %v581_v28, %v581_v28  ;;  %v588_v43 = vrot.slane %v2345_v31, %v2528_v11  ;;  %2233 = vmatprep.subr.mxu1 %v2416_v2  ;;  %v632_v31 = vrot.slane %v2189_v29, %v2528_v11 }
  0x46   : > { %2234 = vmatpush3.msra.mxu1 %v2003_v16 }
  0x47   : > { %v841_v49 = vcombine.low %v581_v28, %v589_v39  ;;  %v858_v56 = vcombine.low %v588_v43, %v598_v40  ;;  %2235 = vmatprep.subr.mxu1 %v2416_v2  ;;  %v1991_v28 = vld [vmem:[%s3054_s4] sm:$0xff]  ;;  %v640_v33 = vcombine.high %v632_v31, %v632_v31 }
  0x48   : > { %1071 = vmatmul.mubr.f32.gmra.mxu0 %v712_v45  ;;  %v837_v45 = vrot.slane %v823_v34, %v2528_v11  ;;  %2236 = vmatpush3.msra.mxu1 %v2002_v17 }
  0x49   : > { %2194 = vmatprep.mubr.msk.f32.mxu0 %vm962_vm0, %v731_v50  ;;  %v606_v50 = vcombine.high %v598_v40, %v598_v40  ;;  %v855_v58 = vrot.slane %v841_v49, %v2528_v11  ;;  %2237 = vmatprep.subr.mxu1 %v2416_v2  ;;  %v908_v35 = vcombine.low %v632_v31, %v640_v33 }
  0x4a   : > { %v839_v54 = vcombine.high %v830_v44, %v837_v45  ;;  %v838_v62 = vcombine.low %v830_v44, %v837_v45 }
  0x4b   : > { %v859_v59 = vcombine.low %v606_v50, %v605_v47  ;;  %v916_v37 = vrot.slane %v908_v35, %v2528_v11 }
  0x4c   : > { %1076 = vmatmul.mubr.f32.gmra.mxu0 %v730_v55  ;;  %v848_v55 = vrot.slane %v840_v46, %v2528_v11 }
  0x4d   : > { %2195 = vmatprep.mubr.msk.f32.mxu0 %vm962_vm0, %v749_v63  ;;  %v866_v63 = vrot.slane %v858_v56, %v2528_v11  ;;  %v873_v1 = vrot.slane %v859_v59, %v2528_v11 }
  0x4e   : > { %v857_v0 = vcombine.high %v848_v55, %v855_v58  ;;  %v856_v5 = vcombine.low %v848_v55, %v855_v58 }
  0x4f   : > { %v875_v6 = vcombine.high %v866_v63, %v873_v1  ;;  %v874_v9 = vcombine.low %v866_v63, %v873_v1 }
  0x50   : > { %1081 = vmatmul.mubr.f32.gmra.mxu0 %v748_v4  ;;  %v877_v4 = vcombine.low %v624_v61, %v623_v60 }
  0x51   : > { %2196 = vmatprep.mubr.msk.f32.mxu0 %vm962_vm0, %v767_v7  ;;  %v884_v7 = vrot.slane %v876_v3, %v2528_v11 }
  0x52   : > { %v891_v8 = vrot.slane %v877_v4, %v2528_v11 }
  0x54   : > { %1086 = vmatmul.mubr.f32.gmra.mxu0 %v766_v18  ;;  %v893_v10 = vcombine.high %v884_v7, %v891_v8  ;;  %v892_v12 = vcombine.low %v884_v7, %v891_v8  ;;  %v2001_v18 = vld [vmem:[%s3054_s4 + $0x50] sm:$0xff] }
  0x55   : > { %2197 = vmatprep.mubr.msk.f32.mxu0 %vm962_vm0, %v785_v25  ;;  %2238 = vmatpush3.msra.mxu1 %v2001_v18  ;;  %v1994_v25 = vld [vmem:[%s3054_s4 + $0x18] sm:$0xff] }
  0x56   : > { %2239 = vmatprep.subr.mxu1 %v2416_v2 }
  0x57   : > { %2240 = vmatpush3.msra.mxu1 %v2000_v19 }
  0x58   : > { %1091 = vmatmul.mubr.f32.gmra.mxu0 %v784_v30  ;;  %2241 = vmatprep.subr.mxu1 %v2416_v2  ;;  %v625_v30 = vcombine.high %v2189_v29, %v2189_v29 }
  0x59   : > { %2198 = vmatprep.mubr.msk.f32.mxu0 %vm962_vm0, %v803_v32  ;;  %2242 = vmatpush3.msra.mxu1 %v1999_v20 }
  0x5a   : > { %2243 = vmatprep.subr.mxu1 %v2416_v2  ;;  %v639_v32 = vrot.slane %v625_v30, %v2528_v11 }
  0x5b   : > { %2244 = vmatpush3.msra.mxu1 %v1998_v21 }
  0x5c   : > { %1096 = vmatmul.mubr.f32.gmra.mxu0 %v802_v42  ;;  %2245 = vmatprep.subr.mxu1 %v2416_v2  ;;  %v641_v34 = vcombine.high %v639_v32, %v639_v32  ;;  %v925_v39 = vcombine.low %v639_v32, %v632_v31  ;;  %v934_v42 = vcombine.low %v640_v33, %v639_v32 }
  0x5d   : > { %2199 = vmatprep.mubr.msk.f32.mxu0 %vm962_vm0, %v821_v48  ;;  %2246 = vmatpush3.msra.mxu1 %v1997_v22 }
  0x5e   : > { %2247 = vmatprep.subr.mxu1 %v2416_v2  ;;  %v909_v36 = vcombine.low %v639_v32, %v641_v34  ;;  %v2783_v41 = vrot.slane %v925_v39, %v2528_v11  ;;  %v935_v43 = vcombine.low %v641_v34, %v632_v31  ;;  %v2790_v48 = vrot.slane %v934_v42, %v2528_v11 }
  0x5f   : > { %2248 = vmatpush3.msra.mxu1 %v1996_v23 }
  0x60   : > { %1101 = vmatmul.mubr.f32.gmra.mxu0 %v820_v53  ;;  %2249 = vmatprep.subr.mxu1 %v2416_v2  ;;  %v923_v38 = vrot.slane %v909_v36, %v2528_v11  ;;  %v2787_v47 = vcombine.low %v916_v37, %v2783_v41  ;;  %v2793_v49 = vrot.slane %v935_v43, %v2528_v11  ;;  %v1491_v53 = vld [vmem:[%s3053_s3 + $0x8] sm:$0x3f] }
  0x61   : > { %2200 = vmatprep.mubr.msk.f32.mxu0 %vm962_vm0, %v839_v54  ;;  %2250 = vmatpush3.msra.mxu1 %v1995_v24  ;;  %v2812_v61 = vrot.slane %v1491_v53, %v2528_v11  ;;  %v1511_v7 = vcombine.high %v1491_v53, %v1491_v53 }
  0x62   : > { %2251 = vmatprep.subr.mxu1 %v2416_v2  ;;  %v2777_v40 = vcombine.low %v916_v37, %v923_v38  ;;  %v2809_v59 = vcombine.low %v2790_v48, %v2793_v49  ;;  %v2841_v30 = vcombine.low %v923_v38, %v916_v37 }
  0x63   : > { %2252 = vmatpush3.msra.mxu1 %v1994_v25  ;;  %v2826_v13 = vcombine.high %v2812_v61, %v2812_v61  ;;  %v2832_v23 = vrot.slane %v1511_v7, %v2528_v11  ;;  %v2836_v25 = vcombine.low %v2790_v48, %v916_v37  ;;  %v2849_v37 = vcombine.low %v2783_v41, %v2790_v48 }
  0x64   : > { %1106 = vmatmul.mubr.f32.gmra.mxu0 %v838_v62  ;;  %2253 = vmatprep.subr.mxu1 %v2416_v2 }
  0x65   : > { %2201 = vmatprep.mubr.msk.f32.mxu0 %vm962_vm0, %v857_v0  ;;  %2254 = vmatpush3.msra.mxu1 %v1993_v26 }
  0x66   : > { %2255 = vmatprep.subr.mxu1 %v2416_v2 }
  0x67   : > { %2256 = vmatpush3.msra.mxu1 %v1992_v27 }
  0x68   : > { %1111 = vmatmul.mubr.f32.gmra.mxu0 %v856_v5  ;;  %2257 = vmatprep.subr.mxu1 %v2416_v2  ;;  %v1490_v2 = vld [vmem:[%s3053_s3] sm:$0xff] }
  0x69   : > { %2202 = vmatprep.mubr.msk.f32.mxu0 %vm962_vm0, %v875_v6  ;;  %2258 = vmatpush3.msra.mxu1 %v1991_v28  ;;  %v1494_v45 = vcombine.high %v1490_v2, %v1490_v2  ;;  %v2804_v57 = vrot.slane %v1490_v2, %v2528_v11 }
  0x6b   : > { %v2800_v54 = vrot.slane %v1494_v45, %v2528_v11  ;;  %v2821_v6 = vcombine.high %v2804_v57, %v2804_v57 }
  0x6c   : > { %1116 = vmatmul.mubr.f32.gmra.mxu0 %v874_v9 }
  0x6d   : > { %2203 = vmatprep.mubr.msk.f32.mxu0 %vm962_vm0, %v893_v10  ;;  %v2816_v0 = vcombine.high %v2800_v54, %v2800_v54 }
  0x70   : > { %1121 = vmatmul.mubr.f32.gmra.mxu0 %v892_v12 }
  0xfc   : > { %v1057_v44 = vpop.f32.mrf.mxu0 }
  0xfd   : > { %v1058_v46 = vadd.f32 %v1057_v44, %v2777_v40 }
  0xfe   : > { %v1059_v50 = vpop.f32.mrf.mxu0 }
  0xff   : > { %v1140_v51 = vcombine.high %v1058_v46, %v1058_v46  ;;  %v1147_v52 = vrot.slane %v1058_v46, %v2528_v11 }
 0x100   : > { %v1062_v55 = vpop.f32.mrf.mxu0 }
 0x101   : > { %v1154_v56 = vrot.slane %v1140_v51, %v2528_v11  ;;  %v1063_v58 = vadd.f32 %v1062_v55, %v2787_v47  ;;  %v1155_v60 = vcombine.high %v1147_v52, %v1147_v52  ;;  %v1434_v22 = vmax.f32 %v1147_v52, 0.0 }
 0x102   : > { %v1064_v62 = vpop.f32.mrf.mxu0 }
 0x103   : > { %v1156_v63 = vcombine.high %v1154_v56, %v1154_v56  ;;  %v1157_v1 = vcombine.high %v1063_v58, %v1063_v58  ;;  %v1164_v3 = vrot.slane %v1063_v58, %v2528_v11  ;;  %v1435_v9 = vmax.f32 %v1155_v60, 0.0 }
 0x104   : > { %v1067_v4 = vpop.f32.mrf.mxu0  ;;  %v1436_v10 = vmax.f32 %v1154_v56, 0.0  ;;  %v1534_v2 = vmul.f32 %v2804_v57, %v1434_v22 }
 0x105   : > { %v1437_v5 = vmax.f32 %v1156_v63, 0.0  ;;  %v1068_v8 = vadd.f32 %v1067_v4, %v2809_v59  ;;  %v1172_v12 = vcombine.high %v1164_v3, %v1164_v3  ;;  %v1171_v15 = vrot.slane %v1157_v1, %v2528_v11 }
 0x106   : > { %v1069_v14 = vpop.f32.mrf.mxu0  ;;  %v1438_v16 = vmax.f32 %v1164_v3, 0.0  ;;  %v1535_v26 = vmul.f32 %v2821_v6, %v1435_v9  ;;  %v1536_v27 = vmul.f32 %v2800_v54, %v1436_v10 }
 0x107   : > { %v1174_v17 = vcombine.high %v1068_v8, %v1068_v8  ;;  %v1537_v18 = vmul.f32 %v2816_v0, %v1437_v5  ;;  %v1439_v19 = vmax.f32 %v1172_v12, 0.0  ;;  %v1181_v20 = vrot.slane %v1068_v8, %v2528_v11 }
 0x108   : > { %v1072_v21 = vpop.f32.mrf.mxu0  ;;  %v1173_v31 = vcombine.high %v1171_v15, %v1171_v15  ;;  %v1440_v32 = vmax.f32 %v1171_v15, 0.0  ;;  %v1538_v33 = vmul.f32 %v2812_v61, %v1438_v16  ;;  %v1646_v38 = vcombine.low %v1534_v2, %v1535_v26 }
 0x109   : > { %v1188_v24 = vrot.slane %v1174_v17, %v2528_v11  ;;  %v1539_v28 = vmul.f32 %v2826_v13, %v1439_v19  ;;  %v1647_v35 = vcombine.low %v1536_v27, %v1537_v18  ;;  %v1189_v36 = vcombine.high %v1181_v20, %v1181_v20 }
 0x10a   : > { %v1074_v29 = vpop.f32.mrf.mxu0  ;;  %v1073_v44 = vadd.f32 %v1072_v21, %v2836_v25  ;;  %v1441_v50 = vmax.f32 %v1173_v31, 0.0  ;;  %v1540_v51 = vmul.f32 %v2832_v23, %v1440_v32  ;;  %v1442_v52 = vmax.f32 %v1181_v20, 0.0 }
 0x10b   : > { %v1190_v34 = vcombine.high %v1188_v24, %v1188_v24  ;;  %v1663_v42 = vcombine.low %v1538_v33, %v1539_v28  ;;  %v2853_v53 = vrot.slane %v1647_v35, %v2528_v11  ;;  %v1443_v55 = vmax.f32 %v1189_v36, 0.0 }
 0x10c   : > { %v1077_v39 = vpop.f32.mrf.mxu0  ;;  %v1191_v56 = vcombine.high %v1073_v44, %v1073_v44  ;;  %v1198_v58 = vrot.slane %v1073_v44, %v2528_v11  ;;  %v1444_v63 = vmax.f32 %v1188_v24, 0.0  ;;  %v1541_v9 = vmul.f32 %v2804_v57, %v1441_v50 }
 0x10d   : > { %v1445_v43 = vmax.f32 %v1190_v34, 0.0  ;;  %v1078_v45 = vadd.f32 %v1077_v39, %v2841_v30  ;;  %v1670_v62 = vrot.slane %v1663_v42, %v2528_v11  ;;  %v1677_v10 = vrot.slane %v1540_v51, %v2528_v11 }
 0x10e   : > { %v1079_v46 = vpop.f32.mrf.mxu0  ;;  %v1205_v4 = vrot.slane %v1191_v56, %v2528_v11  ;;  %v1206_v5 = vcombine.high %v1198_v58, %v1198_v58  ;;  %v1446_v7 = vmax.f32 %v1198_v58, 0.0  ;;  %v1542_v12 = vmul.f32 %v2821_v6, %v1442_v52 }
 0x10f   : > { %v1208_v1 = vcombine.high %v1078_v45, %v1078_v45  ;;  %v1215_v41 = vrot.slane %v1078_v45, %v2528_v11  ;;  %v1545_v3 = vmul.f32 %v2812_v61, %v1445_v43  ;;  %v1654_v20 = vrot.slane %v1646_v38, %v2528_v11 }
 0x110   : > { %v1082_v60 = vpop.f32.mrf.mxu0  ;;  %v1207_v15 = vcombine.high %v1205_v4, %v1205_v4  ;;  %v1447_v16 = vmax.f32 %v1206_v5, 0.0  ;;  %v1546_v17 = vmul.f32 %v2826_v13, %v1446_v7  ;;  %v1543_v21 = vmul.f32 %v2800_v54, %v1443_v55 }
 0x111   : > { %v1222_v14 = vrot.slane %v1208_v1, %v2528_v11  ;;  %v1223_v18 = vcombine.high %v1215_v41, %v1215_v41  ;;  %v1083_v24 = vadd.f32 %v1082_v60, %v2849_v37  ;;  %v1678_v26 = vcombine.low %v1670_v62, %v1677_v10 }
 0x112   : > { %v1084_v8 = vpop.f32.mrf.mxu0  ;;  %v1544_v27 = vmul.f32 %v2816_v0, %v1444_v63  ;;  %v1547_v28 = vmul.f32 %v2832_v23, %v1447_v16  ;;  %v1696_v29 = vcombine.low %v1545_v3, %v1546_v17  ;;  %v2872_v34 = vcombine.low %v2793_v49, %v2790_v48 }
 0x113   : > { %v1224_v22 = vcombine.high %v1222_v14, %v1222_v14  ;;  %v1452_v32 = vmax.f32 %v1222_v14, 0.0  ;;  %v1662_v35 = vcombine.low %v1654_v20, %v2853_v53  ;;  %v1679_v36 = vcombine.low %v1541_v9, %v1542_v12 }
 0x114   : > { %v1087_v19 = vpop.f32.mrf.mxu0  ;;  %v1449_v39 = vmax.f32 %v1207_v15, 0.0  ;;  %v1451_v2 = vmax.f32 %v1223_v18, 0.0  ;;  %v1703_v43 = vrot.slane %v1696_v29, %v2528_v11  ;;  %v1710_v44 = vrot.slane %v1547_v28, %v2528_v11 }
 0x115   : > { %v1453_v33 = vmax.f32 %v1224_v22, 0.0  ;;  %v1225_v46 = vcombine.high %v1083_v24, %v1083_v24  ;;  %v1927_v38 = vsel %vm1926_vm2, %v1678_v26, -inf  ;;  %v1680_v50 = vcombine.low %v1543_v21, %v1544_v27 }
 0x116   : > { %v1089_v31 = vpop.f32.mrf.mxu0  ;;  %v1448_v51 = vmax.f32 %v1205_v4, 0.0  ;;  %v1232_v48 = vrot.slane %v1083_v24, %v2528_v11  ;;  %v1450_v52 = vmax.f32 %v1215_v41, 0.0  ;;  %v1552_v53 = vmul.f32 %v2812_v61, %v1452_v32 }
 0x117   : > { %v1553_v45 = vmul.f32 %v2826_v13, %v1453_v33  ;;  %v1239_v55 = vrot.slane %v1225_v46, %v2528_v11  ;;  %v1088_v56 = vadd.f32 %v1087_v19, %v2872_v34  ;;  %v1687_v58 = vrot.slane %v1679_v36, %v2528_v11 }
 0x118   : > { %v1092_v42 = vpop.f32.mrf.mxu0  ;;  %v1549_v60 = vmul.f32 %v2821_v6, %v1449_v39  ;;  %v1551_v62 = vmul.f32 %v2816_v0, %v1451_v2  ;;  %v1240_v63 = vcombine.high %v1232_v48, %v1232_v48  ;;  %v1711_v3 = vcombine.low %v1703_v43, %v1710_v44 }
 0x119   : > { %v1729_v4 = vcombine.low %v1552_v53, %v1553_v45  ;;  %v1241_v5 = vcombine.high %v1239_v55, %v1239_v55  ;;  %v1454_v7 = vmax.f32 %v1232_v48, 0.0  ;;  %v1928_v41 = vmax.f32 %v1662_v35, %v1927_v38 }
 0x11a   : > { %v1094_v49 = vpop.f32.mrf.mxu0  ;;  %v1694_v8 = vrot.slane %v1680_v50, %v2528_v11  ;;  %v1548_v9 = vmul.f32 %v2804_v57, %v1448_v51  ;;  %v1455_v10 = vmax.f32 %v1240_v63, 0.0  ;;  %v1550_v14 = vmul.f32 %v2800_v54, %v1450_v52 }
 0x11b   : > { %v1457_v15 = vmax.f32 %v1241_v5, 0.0  ;;  %v1554_v16 = vmul.f32 %v2832_v23, %v1454_v7  ;;  %v1242_v17 = vcombine.high %v1088_v56, %v1088_v56  ;;  %v1456_v19 = vmax.f32 %v1239_v55, 0.0 }
 0x11c   : > { %v2886_v1 = vpop.f32.mrf.mxu0  ;;  %v1712_v18 = vcombine.low %v1548_v9, %v1549_v60  ;;  %v1249_v20 = vrot.slane %v1088_v56, %v2528_v11  ;;  %v1093_v21 = vadd.f32 %v1092_v42, %v2777_v40  ;;  %v1935_v24 = vsel %vm1926_vm2, %v1711_v3, -inf }
 0x11d   : > { %v1713_v26 = vcombine.low %v1550_v14, %v1551_v62  ;;  %v1736_v27 = vrot.slane %v1729_v4, %v2528_v11  ;;  %v1256_v28 = vrot.slane %v1242_v17, %v2528_v11  ;;  %v1555_v29 = vmul.f32 %v2804_v57, %v1455_v10 }
 0x11e   : > { %v1099_v12 = vpop.f32.mrf.mxu0  ;;  %v1257_v31 = vcombine.high %v1249_v20, %v1249_v20  ;;  %v1458_v32 = vmax.f32 %v1249_v20, 0.0  ;;  %v1259_v33 = vcombine.high %v1093_v21, %v1093_v21  ;;  %v1557_v36 = vmul.f32 %v2800_v54, %v1457_v15 }
 0x11f   : > { %v1743_v39 = vrot.slane %v1554_v16, %v2528_v11  ;;  %v1258_v2 = vcombine.high %v1256_v28, %v1256_v28  ;;  %v1460_v40 = vmax.f32 %v1256_v28, 0.0  ;;  %v1556_v42 = vmul.f32 %v2821_v6, %v1456_v19 }
 0x120   : > { %v1102_v22 = vpop.f32.mrf.mxu0  ;;  %v1459_v43 = vmax.f32 %v1257_v31, 0.0  ;;  %v1558_v44 = vmul.f32 %v2816_v0, %v1458_v32  ;;  %v1266_v45 = vrot.slane %v1093_v21, %v2528_v11  ;;  %v1727_v38 = vrot.slane %v1713_v26, %v2528_v11 }
 0x121   : > { %v1744_v50 = vcombine.low %v1736_v27, %v1743_v39  ;;  %v1461_v51 = vmax.f32 %v1258_v2, 0.0  ;;  %v1560_v48 = vmul.f32 %v2826_v13, %v1460_v40  ;;  %v1929_v49 = vrot.slane %v1928_v41, 4 }
 0x122   : > { %v1104_v35 = vpop.f32.mrf.mxu0  ;;  %v1695_v52 = vcombine.low %v1687_v58, %v1694_v8  ;;  %v1559_v53 = vmul.f32 %v2812_v61, %v1459_v43  ;;  %v1273_v55 = vrot.slane %v1259_v33, %v2528_v11  ;;  %v1720_v60 = vrot.slane %v1712_v18, %v2528_v11 }
 0x123   : > { %v1561_v62 = vmul.f32 %v2832_v23, %v1461_v51  ;;  %v1746_v63 = vcombine.low %v1557_v36, %v1558_v44  ;;  %v1274_v3 = vcombine.high %v1266_v45, %v1266_v45  ;;  %v1745_v5 = vcombine.low %v1555_v29, %v1556_v42 }
 0x124   : > { %v1107_v46 = vpop.f32.mrf.mxu0  ;;  %v2909_v4 = vmax.f32 %v1695_v52, %v1935_v24  ;;  %v1762_v7 = vcombine.low %v1559_v53, %v1560_v48  ;;  %v1275_v9 = vcombine.high %v1273_v55, %v1273_v55  ;;  %v1728_v12 = vcombine.low %v1720_v60, %v1727_v38 }
 0x125   : > { %v1943_v58 = vsel %vm1926_vm2, %v1744_v50, -inf  ;;  %v1776_v8 = vrot.slane %v1561_v62, %v2528_v11  ;;  %v1463_v15 = vmax.f32 %v1274_v3, 0.0  ;;  %v1464_v16 = vmax.f32 %v1273_v55, 0.0 }
 0x126   : > { %v1109_v56 = vpop.f32.mrf.mxu0  ;;  %v1769_v14 = vrot.slane %v1762_v7, %v2528_v11  ;;  %v1465_v17 = vmax.f32 %v1275_v9, 0.0  ;;  %v1760_v19 = vrot.slane %v1746_v63, %v2528_v11  ;;  %v1462_v20 = vmax.f32 %v1266_v45, 0.0 }
 0x127   : > { %v1098_v21 = vadd.f32 %v2886_v1, %v2787_v47  ;;  %v1103_v24 = vadd.f32 %v1102_v22, %v2809_v59  ;;  %v2920_v26 = vmax.f32 %v1928_v41, %v1929_v49  ;;  %v1937_v27 = vrot.slane %v2909_v4, 4 }
 0x128   : > { %v2911_v10 = vpop.f32.mrf.mxu0  ;;  %v1753_v28 = vrot.slane %v1745_v5, %v2528_v11  ;;  %v1565_v29 = vmul.f32 %v2816_v0, %v1465_v17  ;;  %v2925_v32 = vmax.f32 %v1728_v12, %v1943_v58  ;;  %v1777_v39 = vcombine.low %v1769_v14, %v1776_v8 }
 0x129   : > { %v1276_v33 = vcombine.high %v1098_v21, %v1098_v21  ;;  %v1283_v35 = vrot.slane %v1098_v21, %v2528_v11  ;;  %v1293_v36 = vcombine.high %v1103_v24, %v1103_v24  ;;  %v1563_v47 = vmul.f32 %v2821_v6, %v1463_v15 }
 0x12a   : > { %v1114_v18 = vpop.f32.mrf.mxu0  ;;  %v1564_v59 = vmul.f32 %v2800_v54, %v1464_v16  ;;  %v1300_v1 = vrot.slane %v1103_v24, %v2528_v11  ;;  %v1761_v22 = vcombine.low %v1753_v28, %v1760_v19  ;;  %v1562_v2 = vmul.f32 %v2804_v57, %v1462_v20 }
 0x12b   : > { %v1290_v40 = vrot.slane %v1276_v33, %v2528_v11  ;;  %v1291_v42 = vcombine.high %v1283_v35, %v1283_v35  ;;  %v1466_v44 = vmax.f32 %v1283_v35, 0.0  ;;  %v1307_v45 = vrot.slane %v1293_v36, %v2528_v11 }
 0x12c   : > { %v1117_v31 = vpop.f32.mrf.mxu0  ;;  %v1779_v43 = vcombine.low %v1564_v59, %v1565_v29  ;;  %v1308_v38 = vcombine.high %v1300_v1, %v1300_v1  ;;  %v1108_v52 = vadd.f32 %v1107_v46, %v2836_v25  ;;  %v1951_v53 = vsel %vm1926_vm2, %v1777_v39, -inf }
 0x12d   : > { %v1292_v51 = vcombine.high %v1290_v40, %v1290_v40  ;;  %v1467_v48 = vmax.f32 %v1291_v42, 0.0  ;;  %v1468_v49 = vmax.f32 %v1290_v40, 0.0  ;;  %v1778_v55 = vcombine.low %v1562_v2, %v1563_v47 }
 0x12e   : > { %v1119_v41 = vpop.f32.mrf.mxu0  ;;  %v1309_v56 = vcombine.high %v1307_v45, %v1307_v45  ;;  %v1470_v60 = vmax.f32 %v1300_v1, 0.0  ;;  %v1566_v3 = vmul.f32 %v2812_v61, %v1466_v44  ;;  %v1793_v9 = vrot.slane %v1779_v43, %v2528_v11 }
 0x12f   : > { %v1469_v63 = vmax.f32 %v1292_v51, 0.0  ;;  %v1567_v5 = vmul.f32 %v2826_v13, %v1467_v48  ;;  %v1568_v7 = vmul.f32 %v2832_v23, %v1468_v49  ;;  %v1471_v12 = vmax.f32 %v1308_v38, 0.0 }
 0x130   : > { %v1122_v50 = vpop.f32.mrf.mxu0  ;;  %v1472_v58 = vmax.f32 %v1307_v45, 0.0  ;;  %v1570_v8 = vmul.f32 %v2821_v6, %v1470_v60  ;;  %v2941_v25 = vmax.f32 %v1761_v22, %v1951_v53  ;;  %v1473_v15 = vmax.f32 %v1309_v56, 0.0 }
 0x131   : > { %v1569_v46 = vmul.f32 %v2804_v57, %v1469_v63  ;;  %v1795_v14 = vcombine.low %v1566_v3, %v1567_v5  ;;  %v1786_v16 = vrot.slane %v1778_v55, %v2528_v11  ;;  %v1571_v17 = vmul.f32 %v2800_v54, %v1471_v12 }
 0x132   : > { %v1124_v62 = vpop.f32.mrf.mxu0  ;;  %v1572_v18 = vmul.f32 %v2816_v0, %v1472_v58  ;;  %v1310_v19 = vcombine.high %v1108_v52, %v1108_v52  ;;  %v1809_v21 = vrot.slane %v1568_v7, %v2528_v11  ;;  %v1317_v24 = vrot.slane %v1108_v52, %v2528_v11 }
 0x133   : > { %v1802_v20 = vrot.slane %v1795_v14, %v2528_v11  ;;  %v1113_v28 = vadd.f32 %v2911_v10, %v2841_v30  ;;  %v1794_v29 = vcombine.low %v1786_v16, %v1793_v9  ;;  %v1811_v33 = vcombine.low %v1569_v46, %v1570_v8 }
 0x134   : > { %v1812_v35 = vcombine.low %v1571_v17, %v1572_v18  ;;  %v1324_v36 = vrot.slane %v1310_v19, %v2528_v11  ;;  %v1573_v47 = vmul.f32 %v2812_v61, %v1473_v15  ;;  %v1325_v59 = vcombine.high %v1317_v24, %v1317_v24 }
 0x135   : > { %v1810_v39 = vcombine.low %v1802_v20, %v1809_v21  ;;  %v1474_v1 = vmax.f32 %v1317_v24, 0.0  ;;  %v1327_v2 = vcombine.high %v1113_v28, %v1113_v28  ;;  %v1118_v40 = vadd.f32 %v1117_v31, %v2849_v37 }
 0x136   : > { %v1826_v41 = vrot.slane %v1812_v35, %v2528_v11  ;;  %v1326_v22 = vcombine.high %v1324_v36, %v1324_v36  ;;  %v1475_v43 = vmax.f32 %v1325_v59, 0.0  ;;  %v1334_v10 = vrot.slane %v1113_v28, %v2528_v11 }
 0x137   : > { %v1959_v42 = vsel %vm1926_vm2, %v1810_v39, -inf  ;;  %v1574_v30 = vmul.f32 %v2826_v13, %v1474_v1  ;;  %v1819_v44 = vrot.slane %v1811_v33, %v2528_v11  ;;  %v1476_v45 = vmax.f32 %v1324_v36, 0.0 }
 0x138   : > { %v1477_v38 = vmax.f32 %v1326_v22, 0.0  ;;  %v1123_v51 = vadd.f32 %v1122_v50, %v2872_v34  ;;  %v1575_v48 = vmul.f32 %v2832_v23, %v1475_v43  ;;  %v1341_v52 = vrot.slane %v1327_v2, %v2528_v11 }
 0x139   : > { %v1828_v49 = vcombine.low %v1573_v47, %v1574_v30  ;;  %v1342_v53 = vcombine.high %v1334_v10, %v1334_v10  ;;  %v2963_v37 = vmax.f32 %v1794_v29, %v1959_v42  ;;  %v1827_v31 = vcombine.low %v1819_v44, %v1826_v41 }
 0x13a   : > { %v1478_v55 = vmax.f32 %v1334_v10, 0.0  ;;  %v1344_v56 = vcombine.high %v1118_v40, %v1118_v40  ;;  %v1842_v62 = vrot.slane %v1575_v48, %v2528_v11  ;;  %v1343_v63 = vcombine.high %v1341_v52, %v1341_v52 }
 0x13b   : > { %v1835_v60 = vrot.slane %v1828_v49, %v2528_v11  ;;  %v1479_v3 = vmax.f32 %v1342_v53, 0.0  ;;  %v1577_v5 = vmul.f32 %v2821_v6, %v1477_v38  ;;  %v1480_v34 = vmax.f32 %v1341_v52, 0.0 }
 0x13c   : > { %v1578_v50 = vmul.f32 %v2800_v54, %v1478_v55  ;;  %v1351_v7 = vrot.slane %v1118_v40, %v2528_v11  ;;  %v1481_v12 = vmax.f32 %v1343_v63, 0.0  ;;  %v1358_v8 = vrot.slane %v1344_v56, %v2528_v11 }
 0x13d   : > { %v1843_v9 = vcombine.low %v1835_v60, %v1842_v62  ;;  %v1579_v58 = vmul.f32 %v2816_v0, %v1479_v3  ;;  %v1576_v46 = vmul.f32 %v2804_v57, %v1476_v45  ;;  %v1580_v14 = vmul.f32 %v2812_v61, %v1480_v34 }
 0x13e   : > { %v1359_v15 = vcombine.high %v1351_v7, %v1351_v7  ;;  %v1482_v16 = vmax.f32 %v1351_v7, 0.0  ;;  %v1581_v18 = vmul.f32 %v2826_v13, %v1481_v12  ;;  %v1360_v20 = vcombine.high %v1358_v8, %v1358_v8 }
 0x13f   : > { %v1967_v17 = vsel %vm1926_vm2, %v1843_v9, -inf  ;;  %v1845_v19 = vcombine.low %v1578_v50, %v1579_v58  ;;  %v1844_v21 = vcombine.low %v1576_v46, %v1577_v5  ;;  %v1938_v33 = vmax.f32 %v2909_v4, %v1937_v27 }
 0x140   : > { %v1968_v24 = vmax.f32 %v1827_v31, %v1967_v17  ;;  %v1483_v28 = vmax.f32 %v1359_v15, 0.0  ;;  %v1582_v29 = vmul.f32 %v2832_v23, %v1482_v16  ;;  %v1861_v35 = vcombine.low %v1580_v14, %v1581_v18 }
 0x141   : > { %v1485_v36 = vmax.f32 %v1360_v20, 0.0  ;;  %v1361_v39 = vcombine.high %v1123_v51, %v1123_v51  ;;  %v1945_v47 = vrot.slane %v2925_v32, 4  ;;  %v1953_v59 = vrot.slane %v2941_v25, 4 }
 0x142   : > { %v1859_v1 = vrot.slane %v1845_v19, %v2528_v11  ;;  %v1484_v41 = vmax.f32 %v1358_v8, 0.0  ;;  %v1961_v22 = vrot.slane %v2963_v37, 4  ;;  %v1868_v2 = vrot.slane %v1861_v35, %v2528_v11 }
 0x143   : > { %v1875_v40 = vrot.slane %v1582_v29, %v2528_v11  ;;  %v1368_v42 = vrot.slane %v1123_v51, %v2528_v11  ;;  %v1852_v4 = vrot.slane %v1844_v21, %v2528_v11  ;;  %v1969_v27 = vrot.slane %v1968_v24, 4 }
 0x144   : > { %v1583_v43 = vmul.f32 %v2804_v57, %v1483_v28  ;;  %v1375_v30 = vrot.slane %v1361_v39, %v2528_v11  ;;  %v1585_v10 = vmul.f32 %v2800_v54, %v1485_v36  ;;  %v1584_v49 = vmul.f32 %v2821_v6, %v1484_v41 }
 0x145   : > { %v1876_v44 = vcombine.low %v1868_v2, %v1875_v40  ;;  %v1376_v45 = vcombine.high %v1368_v42, %v1368_v42  ;;  %v1486_v38 = vmax.f32 %v1368_v42, 0.0  ;;  %v1860_v48 = vcombine.low %v1852_v4, %v1859_v1 }
 0x146   : > { %v1377_v52 = vcombine.high %v1375_v30, %v1375_v30  ;;  %v1488_v53 = vmax.f32 %v1375_v30, 0.0  ;;  %v1946_v31 = vmax.f32 %v2925_v32, %v1945_v47  ;;  %v1954_v57 = vmax.f32 %v2941_v25, %v1953_v59 }
 0x147   : > { %v1975_v51 = vsel %vm1926_vm2, %v1876_v44, -inf  ;;  %v1487_v55 = vmax.f32 %v1376_v45, 0.0  ;;  %v1586_v56 = vmul.f32 %v2816_v0, %v1486_v38  ;;  %v1939_v63 = vrot.slane %v1938_v33, 2 }
 0x148   : > { %v1976_v60 = vmax.f32 %v1860_v48, %v1975_v51  ;;  %v1489_v62 = vmax.f32 %v1377_v52, 0.0  ;;  %v1588_v54 = vmul.f32 %v2826_v13, %v1488_v53  ;;  %v1962_v6 = vmax.f32 %v2963_v37, %v1961_v22 }
 0x149   : > { %v1587_v3 = vmul.f32 %v2812_v61, %v1487_v55  ;;  %v1878_v5 = vcombine.low %v1585_v10, %v1586_v56  ;;  %v1877_v34 = vcombine.low %v1583_v43, %v1584_v49  ;;  %v1970_v50 = vmax.f32 %v1968_v24, %v1969_v27  ;;  %v2204_v55 = vld [vmem:[%s3055_s5] ss:$0 sm:$0xff] }
 0x14a   : > { %v1589_v32 = vmul.f32 %v2832_v23, %v1489_v62  ;;  %v1977_v7 = vrot.slane %v1976_v60, 4  ;;  %v1931_v9 = vrot.slane %v2920_v26, 2  ;;  %v1947_v0 = vrot.slane %v1946_v31, 2 }
 0x14b   : > { %v1894_v12 = vcombine.low %v1587_v3, %v1588_v54  ;;  %v1955_v25 = vrot.slane %v1954_v57, 2  ;;  %v1892_v58 = vrot.slane %v1878_v5, %v2528_v11  ;;  %v1963_v46 = vrot.slane %v1962_v6, 2 }
 0x14c   : > { %v1908_v13 = vrot.slane %v1589_v32, %v2528_v11  ;;  %v1978_v8 = vmax.f32 %v1976_v60, %v1977_v7  ;;  %v1940_v14 = vmax.f32 %v1938_v33, %v1939_v63  ;;  %v1885_v37 = vrot.slane %v1877_v34, %v2528_v11 }
 0x14d   : > { %v1901_v61 = vrot.slane %v1894_v12, %v2528_v11  ;;  %v1971_v15 = vrot.slane %v1970_v50, 2  ;;  %v1948_v23 = vmax.f32 %v1946_v31, %v1947_v0  ;;  %v1932_v18 = vmax.f32 %v2920_v26, %v1931_v9 }
 0x14e   : > { %v1979_v17 = vrot.slane %v1978_v8, 2  ;;  %v1893_v19 = vcombine.low %v1885_v37, %v1892_v58  ;;  %v1956_v20 = vmax.f32 %v1954_v57, %v1955_v25  ;;  %v1964_v21 = vmax.f32 %v1962_v6, %v1963_v46 }
 0x14f   : > { %v1909_v16 = vcombine.low %v1901_v61, %v1908_v13  ;;  %v1941_v28 = vrot.slane %v1940_v14, 1  ;;  %v1972_v29 = vmax.f32 %v1970_v50, %v1971_v15  ;;  %v1949_v36 = vrot.slane %v1948_v23, 1 }
 0x150   : > { %v1980_v39 = vmax.f32 %v1978_v8, %v1979_v17  ;;  %v1933_v47 = vrot.slane %v1932_v18, 1  ;;  %v1957_v33 = vrot.slane %v1956_v20, 1  ;;  %v1965_v11 = vrot.slane %v1964_v21, 1 }
 0x151   : > { %v1983_v24 = vsel %vm1926_vm2, %v1909_v16, -inf  ;;  %v1942_v1 = vmax.f32 %v1940_v14, %v1941_v28  ;;  %v1973_v41 = vrot.slane %v1972_v29, 1  ;;  %v1950_v2 = vmax.f32 %v1948_v23, %v1949_v36 }
 0x152   : > { %v1984_v35 = vmax.f32 %v1893_v19, %v1983_v24  ;;  %v1981_v40 = vrot.slane %v1980_v39, 1  ;;  %v1934_v26 = vmax.f32 %v1932_v18, %v1933_v47  ;;  %v1958_v42 = vmax.f32 %v1956_v20, %v1957_v33 }
 0x153   : > { %v1966_v27 = vmax.f32 %v1964_v21, %v1965_v11  ;;  %v1974_v43 = vmax.f32 %v1972_v29, %v1973_v41 }
 0x154   : > { %v1985_v59 = vrot.slane %v1984_v35, 4  ;;  %v2023_v10 = vsel %vm2022_vm3, %v1942_v1, %v1934_v26  ;;  %v1982_v44 = vmax.f32 %v1980_v39, %v1981_v40 }
 0x155   : > { %v2025_v45 = vsel %vm2024_vm4, %v1950_v2, %v2023_v10 }
 0x156   : > { %v1986_v22 = vmax.f32 %v1984_v35, %v1985_v59  ;;  %v2027_v48 = vsel %vm2026_vm5, %v1958_v42, %v2025_v45 }
 0x157   : > { %v2029_v49 = vsel %vm2028_vm6, %v1966_v27, %v2027_v48 }
 0x158   : > { %v1987_v4 = vrot.slane %v1986_v22, 2  ;;  %v2031_v53 = vsel %vm2030_vm7, %v1974_v43, %v2029_v49 }
 0x159   : > { %v2033_v31 = vsel %vm2032_vm8, %v1982_v44, %v2031_v53 }
 0x15a   : > { %v1988_v30 = vmax.f32 %v1986_v22, %v1987_v4 }
 0x15c   : > { %v1989_v38 = vrot.slane %v1988_v30, 1 }
 0x15e   : > { %v1990_v52 = vmax.f32 %v1988_v30, %v1989_v38 }
 0x160   : > { %v2035_v51 = vsel %vm2034_vm9, %v1990_v52, %v2033_v31 }
 0x161   : > { %2260 = vmatmul.mubr.f32.vlgmr.msra.gmra.mxu1 %v2035_v51 }
 0x221   : > { %v2103_v56 = vpop.f32.mrf.mxu1 }
 0x222   : > { %v2104_v57 = vadd.f32 %v2204_v55, %v2103_v56 }
 0x223   : > { %v2261_v60 = vpop.f32.mrf.mxu1 }
 0x224   : > { %2107 = vst [vmem:[%s247_s9] sm:$0xff] %v2104_v57 }
 0x225   : > { %2367 = shalt.err (!%p2364_p3)
}
 0x226   : > { %s2368_s17 = scalar_lea.hbm %s3015_s12, 128  ;;  %s2372_s20 = scalar_lea.hbm %s3056_s6, 256 }
 0x227   : > { %p2369_p4 = scmp.ne.s32.totalorder %s3015_s12, %s2368_s17  ;;  %p2373_p9 = scmp.lt.s32.totalorder %s3015_s12, %s3056_s6 }
 0x228   : > { %p2374_p10 = scmp.lt.s32.totalorder %s2372_s20, %s2368_s17 }
 0x229   : > { %p2370_p7 = pnand %p2369_p4, %p2493_p5 }
 0x22a   : > { %p2375_p11 = por %p2374_p10, %p2373_p9 }
 0x22b   : > { %p2371_p8 = pneg %p2370_p7 }
 0x22d   : > { %p2376_p12 = pnand %p2375_p11, %p2371_p8 }
 0x22f   : > { %2379 = shalt.err (!%p2376_p12)
}
 0x230   : > { %2262 = dma.vmem_to_hbm [thread:$0]  (%p2493_p5), %s2123_s10, 128, %s3015_s12, %s2109_s13  }
 0x231 PF: > { %p2268_p13 = scmp.ge.s32.totalorder %s2414_s24, 2  ;;  %s2134_s9 = sand.u32 1, %s2402_s21  }
 0x232   : > { %s2135_s29 = scalar_lea.sflag [#allocation3], %s2134_s9 }
 0x233   : > { %p2265_p0 = pnand %p2268_p13, %p2497_p6 }
 0x235   : > { %p2266_p1 = pneg %p2265_p0 }
 0x237   : > { %2397 = dma.done.wait (%p2266_p1), %s2135_s29, 128  }
 0x238   : > { %2399 = vsyncadd (%p2266_p1), %s2135_s29, 4294967168  ;;  %p16_p2 = scmp.ge.s32.totalorder %s2480_s27, 4   ;;  %s3059_s21 = smov %s2406_s22 }
 0x239   : > { %s3060_s22 = smov %s2410_s23  ;;  %s3061_s23 = smov %s2491_s30 }
 0x23a   : > { %s3062_s24 = smov %s2480_s27  ;;  %18 = sbr.rel (!%p16_p2) target bundleno = 3 (0x3), region = 79 }
 0x23f   :  { %2140 = vsyncpa [#allocation3], 1 }
 0x240   :  { %2142 = vsyncpa [#allocation3 + $0x1], 1 }

</bundles_post_ra>
